<compile_context>
chip_gen: v6e
topology: v6e:2x2x1
jax: 0.10.0
libtpu: 0.0.40
codegen_flags: <defaults>
</compile_context>

<pallas_src>
import jax
import jax.numpy as jnp
from jax.experimental import pallas as pl
from jax.experimental.pallas import tpu as pltpu


# ----------------------------------------------------------------------------
# Pallas kernel: shrink_dhsn2 forward for one fused (subband, batch) element,
# laid out as (C, P) with P = H*W pixels on the lane axis.
# ----------------------------------------------------------------------------
def shrink_kernel(d_ref, box_ref, w1_ref, w2_ref, wp1a_ref, wp1b_ref,
                  b1_ref, wp2_ref, b2_ref, o_ref):
    eps = 1e-4
    hi = jax.lax.Precision.HIGHEST

    d = d_ref[...]                                   # (C, P) float32
    d2 = d * d

    # env2 = sqrt(avg_pool2d(D^2, k=3, s=1, pad=1, count_include_pad)):
    # box_ref is the (P, P) neighbourhood matrix with the 1/9 already folded
    # in, so the whole pool is a single MXU matmul.
    box = jnp.dot(d2, box_ref[...], precision=hi,
                  preferred_element_type=jnp.float32)
    env2 = jnp.sqrt(jnp.maximum(box, 0.0))

    # Exact divides on purpose (see header): keeps the 1e-3 check tight.
    rat1 = 1.0 / (jnp.abs(d) + eps)
    rat2 = 1.0 / (env2 + eps)

    # 1x1 convs as weights-on-the-left matmuls (lane-dense outputs).
    s1 = jnp.maximum(1.0 - jnp.dot(w1_ref[...], rat1, precision=hi,
                                   preferred_element_type=jnp.float32), 0.0)
    s2 = jnp.maximum(1.0 - jnp.dot(w2_ref[...], rat2, precision=hi,
                                   preferred_element_type=jnp.float32), 0.0)

    # conv(cat([s1, s2], ch), wp_1) == wp1[:, :C] @ s1 + wp1[:, C:] @ s2
    p1 = (jnp.dot(wp1a_ref[...], s1, precision=hi,
                  preferred_element_type=jnp.float32)
          + jnp.dot(wp1b_ref[...], s2, precision=hi,
                    preferred_element_type=jnp.float32)
          + b1_ref[...])
    p1 = jnp.maximum(p1, 0.0)

    p2 = jax.nn.sigmoid(jnp.dot(wp2_ref[...], p1, precision=hi,
                                preferred_element_type=jnp.float32)
                        + b2_ref[...])

    o_ref[...] = p2 * d                              # lane-dense (C, P) store


def _box_matrix(Hs, Ws):
    """(P, P) matrix of the 3x3 zero-padded box average (1/9 included)."""
    P = Hs * Ws
    idx = jnp.arange(P, dtype=jnp.int32)
    hh = idx // Ws
    ww = idx % Ws
    near = ((jnp.abs(hh[:, None] - hh[None, :]) <= 1)
            & (jnp.abs(ww[:, None] - ww[None, :]) <= 1))
    return jnp.where(near, jnp.float32(1.0 / 9.0), jnp.float32(0.0))


def shrink3_pallas(p, LH, HL, HH):
    """shrink_dhsn2.forward applied to all three subbands in ONE pallas_call."""
    N, C, Hs, Ws = LH.shape
    P = Hs * Ws
    B = 3 * N
    # NCHW -> (3N, C, H*W): one stack + metadata reshape, no transposes.
    d = jnp.stack([LH, HL, HH], axis=0).astype(jnp.float32).reshape(B, C, P)

    w1 = jax.nn.relu(p["w_1"][:, :, 0, 0])           # (C, C)  relu hoisted out
    w2 = jax.nn.relu(p["w_2"][:, :, 0, 0])           # (C, C)
    wp1 = p["wp_1"][:, :, 0, 0]                      # (2C, 2C)
    wp1a = wp1[:, :C]                                # (2C, C) acts on shrink1
    wp1b = wp1[:, C:]                                # (2C, C) acts on shrink2
    b1 = p["bi_1"].reshape(2 * C, 1).astype(jnp.float32)
    wp2 = p["wp_2"][:, :, 0, 0]                      # (C, 2C)
    b2 = p["bi_2"].reshape(C, 1).astype(jnp.float32)
    box = _box_matrix(Hs, Ws)                        # (P, P)

    def const_spec(shape):
        zeros = (0,) * len(shape)
        return pl.BlockSpec(shape, lambda b, _z=zeros: _z)

    out = pl.pallas_call(
        shrink_kernel,
        out_shape=jax.ShapeDtypeStruct((B, C, P), jnp.float32),
        grid=(B,),                                   # 3*N parallel steps
        in_specs=[
            pl.BlockSpec((None, C, P), lambda b: (b, 0, 0)),   # D block
            const_spec((P, P)),                                # box matrix
            const_spec((C, C)), const_spec((C, C)),            # w1, w2
            const_spec((2 * C, C)), const_spec((2 * C, C)),    # wp1a, wp1b
            const_spec((2 * C, 1)),                            # b1
            const_spec((C, 2 * C)),                            # wp2
            const_spec((C, 1)),                                # b2
        ],
        out_specs=pl.BlockSpec((None, C, P), lambda b: (b, 0, 0)),
        compiler_params=pltpu.CompilerParams(
            dimension_semantics=("parallel",),
            # Tiny per-step blocks here; explicit limit keeps headroom on v7x
            # (64 MiB physical).  TODO(synk): row-tile P with a halo for very
            # large spatial sizes instead of a dense (P, P) box matrix.
            vmem_limit_bytes=32 * 1024 * 1024,
        ),
    )(d, box, w1, w2, wp1a, wp1b, b1, wp2, b2)

    out = out.reshape(3, N, C, Hs, Ws)
    return out[0], out[1], out[2]


# ----------------------------------------------------------------------------
# Pure-JAX reference for the shrink module (used only to verify the kernel).
# ----------------------------------------------------------------------------
def shrink_ref(p, D):
    eps = 1e-4
    N, C, H, W = D.shape
    hi = jax.lax.Precision.HIGHEST
    w1 = jax.nn.relu(p["w_1"][:, :, 0, 0])
    w2 = jax.nn.relu(p["w_2"][:, :, 0, 0])
    env1 = jnp.abs(D)
    d2p = jnp.pad(D * D, ((0, 0), (0, 0), (1, 1), (1, 1)))
    box = sum(d2p[:, :, i:i + H, j:j + W] for i in range(3) for j in range(3))
    env2 = jnp.sqrt(box / 9.0)
    rat1 = 1.0 / (env1 + eps)
    rat2 = 1.0 / (env2 + eps)

    def conv1x1(x, w):
        return jnp.einsum("nchw,oc->nohw", x, w, precision=hi)

    s1 = jax.nn.relu(1.0 - conv1x1(rat1, w1))
    s2 = jax.nn.relu(1.0 - conv1x1(rat2, w2))
    sc = jnp.concatenate([s1, s2], axis=1)
    p1 = jax.nn.relu(conv1x1(sc, p["wp_1"][:, :, 0, 0])
                     + p["bi_1"][None, :, None, None])
    p2 = jax.nn.sigmoid(conv1x1(p1, p["wp_2"][:, :, 0, 0])
                        + p["bi_2"][None, :, None, None])
    return p2 * D


def shrink3_ref(p, LH, HL, HH):
    return shrink_ref(p, LH), shrink_ref(p, HL), shrink_ref(p, HH)


# ----------------------------------------------------------------------------
# fohwt / iohwt: 4-shift overcomplete orthonormal Haar transform (plain JAX).
# ----------------------------------------------------------------------------
_SHIFTS = ((0, 0), (0, 1), (1, 0), (1, 1))


def _haar_dwt(x):
    a = x[:, :, 0::2, 0::2]
    b = x[:, :, 0::2, 1::2]
    c = x[:, :, 1::2, 0::2]
    d = x[:, :, 1::2, 1::2]
    return ((a + b + c + d) * 0.5, (a - b + c - d) * 0.5,
            (a + b - c - d) * 0.5, (a - b - c + d) * 0.5)


def _haar_idwt(LL, LH, HL, HH):
    a = (LL + LH + HL + HH) * 0.5
    b = (LL - LH + HL - HH) * 0.5
    c = (LL + LH - HL - HH) * 0.5
    d = (LL - LH - HL + HH) * 0.5
    N, C, Hh, Wh = LL.shape
    x = jnp.zeros((N, C, 2 * Hh, 2 * Wh), LL.dtype)
    x = x.at[:, :, 0::2, 0::2].set(a)
    x = x.at[:, :, 0::2, 1::2].set(b)
    x = x.at[:, :, 1::2, 0::2].set(c)
    x = x.at[:, :, 1::2, 1::2].set(d)
    return x


def fohwt(x):
    subs = ([], [], [], [])
    for (sh, sw) in _SHIFTS:
        xs = jnp.roll(x, shift=(-sh, -sw), axis=(2, 3))
        for lst, band in zip(subs, _haar_dwt(xs)):
            lst.append(band)
    return tuple(jnp.concatenate(lst, axis=1) for lst in subs)


def iohwt(LL, LH, HL, HH):
    C = LL.shape[1] // 4
    rec = None
    for idx, (sh, sw) in enumerate(_SHIFTS):
        sl = slice(idx * C, (idx + 1) * C)
        xs = _haar_idwt(LL[:, sl], LH[:, sl], HL[:, sl], HH[:, sl])
        xs = jnp.roll(xs, shift=(sh, sw), axis=(2, 3))
        rec = xs if rec is None else rec + xs
    return rec * 0.25


# ----------------------------------------------------------------------------
# dhsn2_2d forward + deterministic parameter init.
# ----------------------------------------------------------------------------
def dhsn2_forward(params, x, depth, shrink3_fn, bypass_shrinkage=False):
    LH_list, HL_list, HH_list = [], [], []
    LL = x
    for i in range(depth):
        LL, LH, HL, HH = fohwt(x)
        if not bypass_shrinkage:
            LH, HL, HH = shrink3_fn(params[i], LH, HL, HH)
        LH_list.append(LH)
        HL_list.append(HL)
        HH_list.append(HH)
        x = LL
    for i in range(depth):
        indx = depth - i - 1
        LL = iohwt(LL, LH_list[indx], HL_list[indx], HH_list[indx])
    return LL


def init_shrink_params(key, C):
    ks = jax.random.split(key, 6)
    return dict(
        w_1=0.5 * jax.random.uniform(ks[0], (C, C, 1, 1), jnp.float32),
        w_2=0.5 * jax.random.uniform(ks[1], (C, C, 1, 1), jnp.float32),
        wp_1=0.5 * jax.random.uniform(ks[2], (2 * C, 2 * C, 1, 1), jnp.float32),
        bi_1=jax.random.uniform(ks[3], (2 * C,), jnp.float32),
        wp_2=0.5 * jax.random.uniform(ks[4], (C, 2 * C, 1, 1), jnp.float32),
        bi_2=jax.random.uniform(ks[5], (C,), jnp.float32),
    )


if __name__ == "__main__":
    in_channels, depth = 1, 1
    N, H, W = 2, 16, 16

    key = jax.random.PRNGKey(0)
    k_x, k_p = jax.random.split(key)
    x = jax.random.normal(k_x, (N, in_channels, H, W), jnp.float32)

    params = []
    for i in range(depth):
        C = in_channels * 4 ** (i + 1)
        k_p, sub = jax.random.split(k_p)
        params.append(init_shrink_params(sub, C))

    out = dhsn2_forward(params, x, depth, shrink3_fn=shrink3_pallas)
    out = jax.block_until_ready(out)

    ref = dhsn2_forward(params, x, depth, shrink3_fn=shrink3_ref)
    ref = jax.block_until_ready(ref)

    assert out.shape == x.shape, (out.shape, x.shape)
    err = float(jnp.max(jnp.abs(out - ref)))
    assert err < 1e-3, f"max abs diff vs reference: {err}"

    print("KERNEL_OK")
</pallas_src>

<mosaic_0001>
module attributes {stable_mosaic.version = 11 : i64} {
  func.func @shrink_kernel(%arg0: i32, %arg1: memref<1x4x64xf32, #tpu.memory_space<vmem>>, %arg2: memref<64x64xf32, #tpu.memory_space<vmem>>, %arg3: memref<4x4xf32, #tpu.memory_space<vmem>>, %arg4: memref<4x4xf32, #tpu.memory_space<vmem>>, %arg5: memref<8x4xf32, #tpu.memory_space<vmem>>, %arg6: memref<8x4xf32, #tpu.memory_space<vmem>>, %arg7: memref<8x1xf32, #tpu.memory_space<vmem>>, %arg8: memref<4x8xf32, #tpu.memory_space<vmem>>, %arg9: memref<4x1xf32, #tpu.memory_space<vmem>>, %arg10: memref<1x4x64xf32, #tpu.memory_space<vmem>>) attributes {dimension_semantics = [#tpu.dimension_semantics<parallel>], iteration_bounds = array<i64: 6>, scalar_prefetch = 0 : i64, scratch_operands = 0 : i64, tpu.core_type = #tpu.core_type<tc>, window_params = [{transform_indices = @transform_0, window_bounds = array<i64: 1, 4, 64>}, {pipeline_mode = #tpu.pipeline_mode<synchronous>, transform_indices = @transform_1, window_bounds = array<i64: 64, 64>}, {pipeline_mode = #tpu.pipeline_mode<synchronous>, transform_indices = @transform_2, window_bounds = array<i64: 4, 4>}, {pipeline_mode = #tpu.pipeline_mode<synchronous>, transform_indices = @transform_3, window_bounds = array<i64: 4, 4>}, {pipeline_mode = #tpu.pipeline_mode<synchronous>, transform_indices = @transform_4, window_bounds = array<i64: 8, 4>}, {pipeline_mode = #tpu.pipeline_mode<synchronous>, transform_indices = @transform_5, window_bounds = array<i64: 8, 4>}, {pipeline_mode = #tpu.pipeline_mode<synchronous>, transform_indices = @transform_6, window_bounds = array<i64: 8, 1>}, {pipeline_mode = #tpu.pipeline_mode<synchronous>, transform_indices = @transform_7, window_bounds = array<i64: 4, 8>}, {pipeline_mode = #tpu.pipeline_mode<synchronous>, transform_indices = @transform_8, window_bounds = array<i64: 4, 1>}, {transform_indices = @transform_9, window_bounds = array<i64: 1, 4, 64>}]} {
    %c0 = arith.constant 0 : index
    %c0_0 = arith.constant 0 : index
    %c0_1 = arith.constant 0 : index
    %0 = vector.load %arg1[%c0, %c0_0, %c0_1] : memref<1x4x64xf32, #tpu.memory_space<vmem>>, vector<1x4x64xf32>
    %1 = vector.shape_cast %0 : vector<1x4x64xf32> to vector<4x64xf32>
    %2 = arith.mulf %1, %1 : vector<4x64xf32>
    %c0_2 = arith.constant 0 : index
    %c0_3 = arith.constant 0 : index
    %3 = vector.load %arg2[%c0_2, %c0_3] : memref<64x64xf32, #tpu.memory_space<vmem>>, vector<64x64xf32>
    %cst = arith.constant dense<0.000000e+00> : vector<4x64xf32>
    %4 = tpu.matmul %2, %3, %cst {dimension_numbers = #tpu.dot_dimension_numbers<[1], [0], [0], [1], [0, 0, 1, 1], [], []>, precision = #tpu.contract_precision<fp32>} : vector<4x64xf32>, vector<64x64xf32>, vector<4x64xf32> -> vector<4x64xf32>
    %cst_4 = arith.constant 0.000000e+00 : f32
    %5 = vector.broadcast %cst_4 : f32 to vector<4x64xf32>
    %6 = arith.maximumf %4, %5 : vector<4x64xf32>
    %7 = math.sqrt %6 : vector<4x64xf32>
    %8 = math.absf %1 : vector<4x64xf32>
    %cst_5 = arith.constant 9.99999974E-5 : f32
    %9 = vector.broadcast %cst_5 : f32 to vector<4x64xf32>
    %10 = arith.addf %8, %9 : vector<4x64xf32>
    %cst_6 = arith.constant 1.000000e+00 : f32
    %11 = vector.broadcast %cst_6 : f32 to vector<4x64xf32>
    %12 = arith.divf %11, %10 : vector<4x64xf32>
    %cst_7 = arith.constant 9.99999974E-5 : f32
    %13 = vector.broadcast %cst_7 : f32 to vector<4x64xf32>
    %14 = arith.addf %7, %13 : vector<4x64xf32>
    %cst_8 = arith.constant 1.000000e+00 : f32
    %15 = vector.broadcast %cst_8 : f32 to vector<4x64xf32>
    %16 = arith.divf %15, %14 : vector<4x64xf32>
    %c0_9 = arith.constant 0 : index
    %c0_10 = arith.constant 0 : index
    %17 = vector.load %arg3[%c0_9, %c0_10] : memref<4x4xf32, #tpu.memory_space<vmem>>, vector<4x4xf32>
    %cst_11 = arith.constant dense<0.000000e+00> : vector<4x64xf32>
    %18 = tpu.matmul %17, %12, %cst_11 {dimension_numbers = #tpu.dot_dimension_numbers<[1], [0], [0], [1], [0, 0, 1, 1], [], []>, precision = #tpu.contract_precision<fp32>} : vector<4x4xf32>, vector<4x64xf32>, vector<4x64xf32> -> vector<4x64xf32>
    %cst_12 = arith.constant 1.000000e+00 : f32
    %19 = vector.broadcast %cst_12 : f32 to vector<4x64xf32>
    %20 = arith.subf %19, %18 : vector<4x64xf32>
    %cst_13 = arith.constant 0.000000e+00 : f32
    %21 = vector.broadcast %cst_13 : f32 to vector<4x64xf32>
    %22 = arith.maximumf %20, %21 : vector<4x64xf32>
    %c0_14 = arith.constant 0 : index
    %c0_15 = arith.constant 0 : index
    %23 = vector.load %arg4[%c0_14, %c0_15] : memref<4x4xf32, #tpu.memory_space<vmem>>, vector<4x4xf32>
    %cst_16 = arith.constant dense<0.000000e+00> : vector<4x64xf32>
    %24 = tpu.matmul %23, %16, %cst_16 {dimension_numbers = #tpu.dot_dimension_numbers<[1], [0], [0], [1], [0, 0, 1, 1], [], []>, precision = #tpu.contract_precision<fp32>} : vector<4x4xf32>, vector<4x64xf32>, vector<4x64xf32> -> vector<4x64xf32>
    %cst_17 = arith.constant 1.000000e+00 : f32
    %25 = vector.broadcast %cst_17 : f32 to vector<4x64xf32>
    %26 = arith.subf %25, %24 : vector<4x64xf32>
    %cst_18 = arith.constant 0.000000e+00 : f32
    %27 = vector.broadcast %cst_18 : f32 to vector<4x64xf32>
    %28 = arith.maximumf %26, %27 : vector<4x64xf32>
    %c0_19 = arith.constant 0 : index
    %c0_20 = arith.constant 0 : index
    %29 = vector.load %arg5[%c0_19, %c0_20] : memref<8x4xf32, #tpu.memory_space<vmem>>, vector<8x4xf32>
    %cst_21 = arith.constant dense<0.000000e+00> : vector<8x64xf32>
    %30 = tpu.matmul %29, %22, %cst_21 {dimension_numbers = #tpu.dot_dimension_numbers<[1], [0], [0], [1], [0, 0, 1, 1], [], []>, precision = #tpu.contract_precision<fp32>} : vector<8x4xf32>, vector<4x64xf32>, vector<8x64xf32> -> vector<8x64xf32>
    %c0_22 = arith.constant 0 : index
    %c0_23 = arith.constant 0 : index
    %31 = vector.load %arg6[%c0_22, %c0_23] : memref<8x4xf32, #tpu.memory_space<vmem>>, vector<8x4xf32>
    %cst_24 = arith.constant dense<0.000000e+00> : vector<8x64xf32>
    %32 = tpu.matmul %31, %28, %cst_24 {dimension_numbers = #tpu.dot_dimension_numbers<[1], [0], [0], [1], [0, 0, 1, 1], [], []>, precision = #tpu.contract_precision<fp32>} : vector<8x4xf32>, vector<4x64xf32>, vector<8x64xf32> -> vector<8x64xf32>
    %33 = arith.addf %30, %32 : vector<8x64xf32>
    %c0_25 = arith.constant 0 : index
    %c0_26 = arith.constant 0 : index
    %34 = vector.load %arg7[%c0_25, %c0_26] : memref<8x1xf32, #tpu.memory_space<vmem>>, vector<8x1xf32>
    %35 = vector.broadcast %34 : vector<8x1xf32> to vector<8x64xf32>
    %36 = arith.addf %33, %35 : vector<8x64xf32>
    %cst_27 = arith.constant 0.000000e+00 : f32
    %37 = vector.broadcast %cst_27 : f32 to vector<8x64xf32>
    %38 = arith.maximumf %36, %37 : vector<8x64xf32>
    %c0_28 = arith.constant 0 : index
    %c0_29 = arith.constant 0 : index
    %39 = vector.load %arg8[%c0_28, %c0_29] : memref<4x8xf32, #tpu.memory_space<vmem>>, vector<4x8xf32>
    %cst_30 = arith.constant dense<0.000000e+00> : vector<4x64xf32>
    %40 = tpu.matmul %39, %38, %cst_30 {dimension_numbers = #tpu.dot_dimension_numbers<[1], [0], [0], [1], [0, 0, 1, 1], [], []>, precision = #tpu.contract_precision<fp32>} : vector<4x8xf32>, vector<8x64xf32>, vector<4x64xf32> -> vector<4x64xf32>
    %c0_31 = arith.constant 0 : index
    %c0_32 = arith.constant 0 : index
    %41 = vector.load %arg9[%c0_31, %c0_32] : memref<4x1xf32, #tpu.memory_space<vmem>>, vector<4x1xf32>
    %42 = vector.broadcast %41 : vector<4x1xf32> to vector<4x64xf32>
    %43 = arith.addf %40, %42 : vector<4x64xf32>
    %44 = arith.negf %43 : vector<4x64xf32>
    %45 = math.exp %44 : vector<4x64xf32>
    %cst_33 = arith.constant 1.000000e+00 : f32
    %46 = vector.broadcast %cst_33 : f32 to vector<4x64xf32>
    %47 = arith.addf %46, %45 : vector<4x64xf32>
    %48 = arith.divf %46, %47 : vector<4x64xf32>
    %49 = arith.mulf %48, %1 : vector<4x64xf32>
    %c0_34 = arith.constant 0 : index
    %c0_35 = arith.constant 0 : index
    %c0_36 = arith.constant 0 : index
    %50 = vector.load %arg10[%c0_34, %c0_35, %c0_36] : memref<1x4x64xf32, #tpu.memory_space<vmem>>, vector<1x4x64xf32>
    %51 = vector.shape_cast %50 : vector<1x4x64xf32> to vector<4x64xf32>
    %52 = vector.shape_cast %49 : vector<4x64xf32> to vector<1x4x64xf32>
    tpu.vector_store %arg10[%c0_34, %c0_35, %c0_36], %52 {strides = array<i32>} : memref<1x4x64xf32, #tpu.memory_space<vmem>>, vector<1x4x64xf32>,
    return
  }
  func.func @transform_0(%arg0: i32) -> (i32, i32, i32) {
    %c0_i32 = arith.constant 0 : i32
    %c0_i32_0 = arith.constant 0 : i32
    %c0_i32_1 = arith.constant 0 : i32
    return %arg0, %c0_i32, %c0_i32_0 : i32, i32, i32
  }
  func.func @transform_1(%arg0: i32) -> (i32, i32) {
    %c0_i32 = arith.constant 0 : i32
    %c0_i32_0 = arith.constant 0 : i32
    %c0_i32_1 = arith.constant 0 : i32
    return %c0_i32, %c0_i32_0 : i32, i32
  }
  func.func @transform_2(%arg0: i32) -> (i32, i32) {
    %c0_i32 = arith.constant 0 : i32
    %c0_i32_0 = arith.constant 0 : i32
    %c0_i32_1 = arith.constant 0 : i32
    return %c0_i32, %c0_i32_0 : i32, i32
  }
  func.func @transform_3(%arg0: i32) -> (i32, i32) {
    %c0_i32 = arith.constant 0 : i32
    %c0_i32_0 = arith.constant 0 : i32
    %c0_i32_1 = arith.constant 0 : i32
    return %c0_i32, %c0_i32_0 : i32, i32
  }
  func.func @transform_4(%arg0: i32) -> (i32, i32) {
    %c0_i32 = arith.constant 0 : i32
    %c0_i32_0 = arith.constant 0 : i32
    %c0_i32_1 = arith.constant 0 : i32
    return %c0_i32, %c0_i32_0 : i32, i32
  }
  func.func @transform_5(%arg0: i32) -> (i32, i32) {
    %c0_i32 = arith.constant 0 : i32
    %c0_i32_0 = arith.constant 0 : i32
    %c0_i32_1 = arith.constant 0 : i32
    return %c0_i32, %c0_i32_0 : i32, i32
  }
  func.func @transform_6(%arg0: i32) -> (i32, i32) {
    %c0_i32 = arith.constant 0 : i32
    %c0_i32_0 = arith.constant 0 : i32
    %c0_i32_1 = arith.constant 0 : i32
    return %c0_i32, %c0_i32_0 : i32, i32
  }
  func.func @transform_7(%arg0: i32) -> (i32, i32) {
    %c0_i32 = arith.constant 0 : i32
    %c0_i32_0 = arith.constant 0 : i32
    %c0_i32_1 = arith.constant 0 : i32
    return %c0_i32, %c0_i32_0 : i32, i32
  }
  func.func @transform_8(%arg0: i32) -> (i32, i32) {
    %c0_i32 = arith.constant 0 : i32
    %c0_i32_0 = arith.constant 0 : i32
    %c0_i32_1 = arith.constant 0 : i32
    return %c0_i32, %c0_i32_0 : i32, i32
  }
  func.func @transform_9(%arg0: i32) -> (i32, i32, i32) {
    %c0_i32 = arith.constant 0 : i32
    %c0_i32_0 = arith.constant 0 : i32
    %c0_i32_1 = arith.constant 0 : i32
    return %arg0, %c0_i32, %c0_i32_0 : i32, i32, i32
  }
}

</mosaic_0001>

<bundles_post_ra>
// kernel: tpu_custom_call.1
= control target key start
LH: loop header
LB: loop body
LE: loop exit
PB: predicated region body
PF: predicated region fallthrough
CT: control target
= control target key end

     0   :  { %14 = vsyncpa [#allocation3], 0  ;;  %s4329_s0 = inlined_call_operand.vmem [shape: f32[6,4,64], index: 0, kind: input, shape index: {}]   ;;  %s4330_s1 = inlined_call_operand.hbm [shape: f32[64,64], index: 1, kind: input, shape index: {}]   ;;  %s4331_s2 = inlined_call_operand.vmem [shape: f32[4,4], index: 2, kind: input, shape index: {}]   ;;  %s4332_s3 = inlined_call_operand.vmem [shape: f32[4,4], index: 3, kind: input, shape index: {}]   ;;  %s4333_s4 = inlined_call_operand.vmem [shape: f32[8,4], index: 4, kind: input, shape index: {}]   ;;  %s4334_s5 = inlined_call_operand.vmem [shape: f32[8,4], index: 5, kind: input, shape index: {}]   ;;  %s4335_s6 = inlined_call_operand.vmem [shape: f32[8,1], index: 6, kind: input, shape index: {}]   ;;  %s4336_s7 = inlined_call_operand.vmem [shape: f32[4,8], index: 7, kind: input, shape index: {}]   ;;  %s4337_s8 = inlined_call_operand.vmem [shape: f32[4,1], index: 8, kind: input, shape index: {}]   ;;  %s4338_s9 = inlined_call_operand.hbm [shape: f32[6,4,64], index: 9, kind: output, shape index: {}]  }
   0x1   :  { %15 = vsyncpa [#allocation4], 0 }
   0x2   :  { %17 = vsyncpa [#allocation4 + $0x1], 0  ;;  %s3892_s30 = smov 0   ;;  %s3894_s10 = smov 0  }
   0x3   :  { %s3896_s11 = smov 0   ;;  %s3898_s12 = smov 0  }
   0x4 LB: > { %s3913_s13 = sadd.s32 4294967295, %s3833_s12   ;;  %s3286_s14 = sadd.s32 4294967294, %s3833_s12   ;;  %s3833_s12 = sphi %s3898_s12, %s4346_s12   ;;  %s3829_s11 = sphi %s3896_s11, %s4345_s11   ;;  %s3825_s10 = sphi %s3894_s10, %s4344_s10   ;;  %s3821_s30 = sphi %s3892_s30, %s4343_s30  }
   0x5   : > { %s3917_s15 = sadd.s32 1, %s3833_s12   ;;  %s224_s16 = sadd.s32 1, %s3829_s11 }
   0x6   : > { %s221_s17 = ssub.s32 %s3833_s12, %s3917_s15  ;;  %p234_p0 = scmp.ne.s32.totalorder %s3829_s11, %s3825_s10 }
   0x7   : > { %p222_p1 = scmp.eq.s32.totalorder %s221_s17, 0  ;;  %p235_p2 = scmp.eq.s32.totalorder %s3913_s13, 5 }
   0x8   : > { %p240_p3 = scmp.ne.s32.totalorder %s3825_s10, %s3821_s30  ;;  %p241_p4 = scmp.eq.s32.totalorder %s3286_s14, 5 }
   0x9   : > { %s3928_s18 = scalar_select %p222_p1, %s3829_s11, %s224_s16  }
   0xa   : > { %p3930_p5 = por %p235_p2, %p234_p0  ;;  %p3934_p6 = por %p241_p4, %p240_p3 }
   0xb   : > { %p3287_p7 = scmp.ge.s32.totalorder %s3833_s12, 1  ;;  %p248_p8 = scmp.lt.s32.totalorder %s3833_s12, 7 }
   0xc   : > { %s4340_s20 = scalar_select %p3934_p6, 1, 0 }
   0xd   : > { %p3691_p9 = scmp.eq.s32.totalorder %s3913_s13, 0  ;;  %p3941_p10 = pnand %p3287_p7, %p248_p8 }
   0xe   : > { %s3835_s22 = smov [#allocation2]  }
   0xf   : > { %s260_s23 = sshll.u32 %s3835_s22, 4  ;;  %p3683_p11 = pneg %p3941_p10  ;;  %s261_s23 = int_to_ptr.vmem [resolvable:$true] %s260_s23 }
  0x10   : > { %s3754_s24 = scalar_lea.vmem %s261_s23, 1024  ;;  %p3762_p3 = scmp.lt.s32.totalorder %s261_s23, %s261_s23 }
  0x11   : > { %p3684_p12 = pnand %p3691_p9, %p3683_p11  ;;  %p3755_p0 = scmp.ne.s32.totalorder %s261_s23, %s3754_s24 }
  0x12   : > { %p3763_p4 = scmp.lt.s32.totalorder %s3754_s24, %s3754_s24 }
  0x13   : > { %p3745_p13 = pneg %p3684_p12 }
  0x14   : > { %p3764_p6 = por %p3763_p4, %p3762_p3 }
  0x15   : > { %p3757_p1 = pnand %p3755_p0, %p3745_p13 }
  0x17   : > { %p3758_p2 = pneg %p3757_p1 }
  0x19   : > { %p3765_p7 = pnand %p3764_p6, %p3758_p2 }
  0x1b   : > { %3768 = shalt.err (!%p3765_p7)
}
  0x1c   : > { %s3836_s25 = smov 128   ;;  %s3837_s26 = smov 8  }
  0x1d   : > { %3686 = dma.hbm_to_vmem [thread:$0]  (!%p3684_p12), %s4330_s1, 1024, %s261_s23, [#allocation3], %s3836_s25, %s3836_s25, %s3837_s26  }
  0x1e   : > { %304 = sbr.rel (%p3941_p10) target bundleno = 1040 (0x410), region = 56 }
  0x23   : > { %3812 = dma.done.wait (%p3691_p9), [#allocation3], 1024  }
  0x24   : > { %3814 = vsyncadd (%p3691_p9), [#allocation3], 4294966272  ;;  %p339_p8 = scmp.lt.s32.totalorder %s3913_s13, 5  ;;  %v3838_v0 = vmov 0.0   ;;  %vm3839_vm0 = vmmov 0   ;;  %v352_v1 = vld [vmem:[#allocation2 + $0x38] sm:$0xff] }
  0x25   : > { %3413 = vmatprep.subr.mxu0 %v3838_v0  ;;  %3432 = vmatprep.subr.mxu1 %v3838_v0  ;;  %v351_v2 = vld [vmem:[#allocation2 + $0x30] sm:$0xff]  ;;  %v350_v3 = vld [vmem:[#allocation2 + $0x28] sm:$0xff]  ;;  %v3969_v4 = vand.u32 4294901760, %v352_v1  ;;  %v349_v7 = vld [vmem:[#allocation2 + $0x20] sm:$0xff]  ;;  %vm353_vm1 = vcmask 523264   ;;  %vm910_vm2 = vcmask 31744  }
  0x26   : > { %3429 = vmatprep.mubr.msk.f32.mxu0 %vm3839_vm0, %v3838_v0  ;;  %s340_s29 = scalar_select %p339_p8, %s3913_s13, 5  ;;  %3448 = vmatprep.mubr.msk.f32.mxu1 %vm3839_vm0, %v3838_v0  ;;  %v3971_v5 = vand.u32 4294901760, %v351_v2  ;;  %v3973_v6 = vand.u32 4294901760, %v350_v3  ;;  %v348_v8 = vld [vmem:[#allocation2 + $0x18] sm:$0xff]  ;;  %v347_v9 = vld [vmem:[#allocation2 + $0x10] sm:$0xff]  ;;  %v3975_v10 = vand.u32 4294901760, %v349_v7 }
  0x27   : > { %v3977_v11 = vand.u32 4294901760, %v348_v8  ;;  %v3979_v12 = vand.u32 4294901760, %v347_v9  ;;  %v346_v13 = vld [vmem:[#allocation2 + $0x8] sm:$0xff]  ;;  %3414 = vmatpush3.msra.mxu0 %v3969_v4  ;;  %v3983_v14 = vsub.f32 %v352_v1, %v3969_v4  ;;  %v345_v17 = vld [vmem:[#allocation2] sm:$0xff]  ;;  %vm914_vm3 = vcmask 1043456   ;;  %s336_s24 = sand.u32 1, %s3825_s10  }
  0x28   : > { %s3293_s14 = sshll.u32 %s340_s29, 2  ;;  %v3986_v15 = vsub.f32 %v351_v2, %v3971_v5  ;;  %v3989_v16 = vsub.f32 %v350_v3, %v3973_v6  ;;  %3415 = vmatprep.subr.mxu0 %v3838_v0  ;;  %v3994_v19 = vand.u32 4294901760, %v346_v13  ;;  %v3997_v20 = vsub.f32 %v349_v7, %v3975_v10  ;;  %v909_v60 = vld [vmem:[%s4331_s2] sm:$0xf]  ;;  %s3292_s25 = sshll.u32 %s336_s24, 2 }
  0x29   : > { %s342_s21 = scalar_lea.vmem %s4329_s0, %s3293_s14  ;;  %3416 = vmatpush3.msra.mxu0 %v3971_v5  ;;  %v459_v22 = vand.u32 4294901760, %v3983_v14  ;;  %v4006_v25 = vsub.f32 %v348_v8, %v3977_v11  ;;  %v4009_v26 = vand.u32 4294901760, %v345_v17  ;;  %v4013_v29 = vsub.f32 %v347_v9, %v3979_v12  ;;  %s3296_s26 = sshll.u32 %s3913_s13, 6 }
  0x2a   : > { %v3991_v18 = vld [vmem:[%s342_s21] sm:$0xf]  ;;  %v466_v23 = vand.u32 4294901760, %v3986_v15  ;;  %v473_v24 = vand.u32 4294901760, %v3989_v16  ;;  %3417 = vmatprep.subr.mxu0 %v3838_v0  ;;  %v480_v27 = vand.u32 4294901760, %v3997_v20  ;;  %v4039_v40 = vsub.f32 %v346_v13, %v3994_v19  ;;  %s338_s27 = scalar_lea.vmem [#allocation5], %s3292_s25  ;;  %s3213_s16 = scalar_lea.hbm %s4338_s9, %s3296_s26 }
  0x2b   : > { %v344_v21 = vmul.f32 %v3991_v18, %v3991_v18  ;;  %3418 = vmatpush3.msra.mxu0 %v3973_v6  ;;  %v460_v30 = vsub.f32 %v3983_v14, %v459_v22  ;;  %v487_v35 = vand.u32 4294901760, %v4006_v25  ;;  %v494_v39 = vand.u32 4294901760, %v4013_v29  ;;  %s3215_s28 = sshll.u32 %s338_s27, 4  ;;  %s3202_s17 = scalar_lea.sflag [#allocation4], %s336_s24  ;;  %s3216_s28 = int_to_ptr.vmem [resolvable:$true] %s3215_s28 }
  0x2c   : > { %v467_v31 = vsub.f32 %v3986_v15, %v466_v23  ;;  %v474_v32 = vsub.f32 %v3989_v16, %v473_v24  ;;  %3419 = vmatprep.subr.mxu0 %v3838_v0  ;;  %v481_v34 = vsub.f32 %v3997_v20, %v480_v27  ;;  %v4047_v44 = vsub.f32 %v345_v17, %v4009_v26  ;;  %s3769_s21 = scalar_lea.vmem %s3216_s28, 64  ;;  %s3841_s22 = smov [#allocation5]  }
  0x2d   : > { %v355_v28 = vsel %vm353_vm1, %v344_v21, 0  ;;  %3420 = vmatpush3.msra.mxu0 %v3975_v10  ;;  %v461_v36 = vand.u32 4294901760, %v460_v30  ;;  %v488_v43 = vsub.f32 %v4006_v25, %v487_v35  ;;  %v501_v45 = vand.u32 4294901760, %v4039_v40  ;;  %p3770_p6 = scmp.ne.s32.totalorder %s3216_s28, %s3769_s21  ;;  %s3773_s13 = sshll.u32 %s3841_s22, 4  ;;  %s3774_s13 = int_to_ptr.vmem [resolvable:$false] %s3773_s13 }
  0x2e   : > { %v4025_v33 = vand.u32 4294901760, %v355_v28  ;;  %v468_v37 = vand.u32 4294901760, %v467_v31  ;;  %3421 = vmatprep.subr.mxu0 %v3838_v0  ;;  %v475_v41 = vand.u32 4294901760, %v474_v32  ;;  %v482_v46 = vand.u32 4294901760, %v481_v34  ;;  %s3775_s23 = scalar_lea.vmem %s3774_s13, 128  ;;  %p3776_p11 = scmp.lt.s32.totalorder %s3216_s28, %s3774_s13 }
  0x2f   : > { %3422 = vmatpush3.msra.mxu0 %v3977_v11  ;;  %3433 = vmatpush3.msra.mxu1 %v461_v36  ;;  %v495_v48 = vsub.f32 %v4013_v29, %v494_v39  ;;  %v508_v49 = vand.u32 4294901760, %v4047_v44  ;;  %v489_v51 = vand.u32 4294901760, %v488_v43  ;;  %v502_v52 = vsub.f32 %v4039_v40, %v501_v45  ;;  %p3771_p9 = pnand %p3770_p6, %p3930_p5  ;;  %p3777_p12 = scmp.lt.s32.totalorder %s3775_s23, %s3769_s21 }
  0x30   : > { %v4034_v38 = vsub.f32 %v355_v28, %v4025_v33  ;;  %3423 = vmatprep.subr.mxu0 %v3838_v0  ;;  %3434 = vmatprep.subr.mxu1 %v3838_v0  ;;  %v902_v57 = vand.u32 2147483647, %v3991_v18  ;;  %v912_v61 = vsel %vm910_vm2, %v909_v60, 0  ;;  %vm2742_vm6 = vcmask 64512  }
  0x31   : > { %3424 = vmatpush3.msra.mxu0 %v3979_v12  ;;  %3435 = vmatpush3.msra.mxu1 %v468_v37  ;;  %v496_v53 = vand.u32 4294901760, %v495_v48  ;;  %v509_v54 = vsub.f32 %v4047_v44, %v508_v49  ;;  %v503_v55 = vand.u32 4294901760, %v502_v52  ;;  %v984_v63 = vand.u32 4294901760, %v912_v61  ;;  %p3772_p10 = pneg %p3771_p9  ;;  %p3778_p13 = por %p3777_p12, %p3776_p11 }
  0x32   : > { %v432_v42 = vand.u32 4294901760, %v4034_v38  ;;  %3425 = vmatprep.subr.mxu0 %v3838_v0  ;;  %3436 = vmatprep.subr.mxu1 %v3838_v0  ;;  %v903_v58 = vadd.f32 0.0001, %v902_v57  ;;  %vm3199_vm7 = vcmask 519168  }
  0x33   : > { %3426 = vmatpush3.msra.mxu0 %v3994_v19  ;;  %3437 = vmatpush3.msra.mxu1 %v475_v41  ;;  %v510_v56 = vand.u32 4294901760, %v509_v54  ;;  %v985_v2 = vsub.f32 %v912_v61, %v984_v63  ;;  %p3779_p0 = pnand %p3778_p13, %p3772_p10 }
  0x34   : > { %v433_v47 = vsub.f32 %v4034_v38, %v432_v42  ;;  %3427 = vmatprep.subr.mxu0 %v3838_v0  ;;  %3438 = vmatprep.subr.mxu1 %v3838_v0  ;;  %3733 = vrcp.f32 %v903_v58 }
  0x35   : > { %3428 = vmatpush3.msra.mxu0 %v4009_v26  ;;  %3439 = vmatpush3.msra.mxu1 %v482_v46 }
  0x36   : > { %v434_v50 = vand.u32 4294901760, %v433_v47  ;;  %3440 = vmatprep.subr.mxu1 %v3838_v0  ;;  %3451 = vmatprep.subr.mxu0 %v3838_v0 }
  0x37   : > { %3441 = vmatpush3.msra.mxu1 %v489_v51 }
  0x38   : > { %3430 = vmatmul.mubr.f32.vlgmr.msra.gmra.mxu0 %v434_v50  ;;  %3442 = vmatprep.subr.mxu1 %v3838_v0 }
  0x39   : > { %3452 = vmatpush3.msra.mxu0 %v3983_v14  ;;  %3443 = vmatpush3.msra.mxu1 %v496_v53 }
  0x3a   : > { %3453 = vmatprep.subr.mxu0 %v3838_v0  ;;  %3444 = vmatprep.subr.mxu1 %v3838_v0 }
  0x3b   : > { %3454 = vmatpush3.msra.mxu0 %v3986_v15  ;;  %3445 = vmatpush3.msra.mxu1 %v503_v55 }
  0x3c   : > { %3455 = vmatprep.subr.mxu0 %v3838_v0  ;;  %3446 = vmatprep.subr.mxu1 %v3838_v0 }
  0x3d   : > { %3456 = vmatpush3.msra.mxu0 %v3989_v16  ;;  %3447 = vmatpush3.msra.mxu1 %v510_v56 }
  0x3e   : > { %3457 = vmatprep.subr.mxu0 %v3838_v0  ;;  %3449 = vmatmul.mubr.f32.vlgmr.msra.gmra.mxu1 %v4025_v33 }
  0x3f   : > { %3458 = vmatpush3.msra.mxu0 %v3997_v20  ;;  %3470 = vmatprep.subr.mxu1 %v3838_v0 }
  0x40   : > { %3459 = vmatprep.subr.mxu0 %v3838_v0  ;;  %3471 = vmatpush3.msra.mxu1 %v3969_v4 }
  0x41   : > { %3460 = vmatpush3.msra.mxu0 %v4006_v25  ;;  %3472 = vmatprep.subr.mxu1 %v3838_v0  ;;  %v3734_v59 = vpop.eup %3733 }
  0x42   : > { %3461 = vmatprep.subr.mxu0 %v3838_v0  ;;  %3473 = vmatpush3.msra.mxu1 %v3971_v5  ;;  %v916_v62 = vsel %vm914_vm3, %v3734_v59, 0 }
  0x43   : > { %3462 = vmatpush3.msra.mxu0 %v4013_v29  ;;  %3474 = vmatprep.subr.mxu1 %v3838_v0  ;;  %v949_v1 = vand.u32 4294901760, %v916_v62  ;;  %v1366_v29 = vld [vmem:[%s4332_s3] sm:$0xf] }
  0x44   : > { %3463 = vmatprep.subr.mxu0 %v3838_v0  ;;  %3475 = vmatpush3.msra.mxu1 %v3973_v6 }
  0x45   : > { %3464 = vmatpush3.msra.mxu0 %v4039_v40  ;;  %3476 = vmatprep.subr.mxu1 %v3838_v0  ;;  %v1026_v3 = vsub.f32 %v916_v62, %v949_v1 }
  0x46   : > { %3465 = vmatprep.subr.mxu0 %v3838_v0  ;;  %3467 = vmatprep.mubr.msk.f32.mxu0 %vm3839_vm0, %v3838_v0 }
  0x47   : > { %3466 = vmatpush3.msra.mxu0 %v4047_v44  ;;  %3477 = vmatpush3.msra.mxu1 %v3975_v10 }
  0x48   : > { %3468 = vmatmul.mubr.f32.vlgmr.msra.gmra.mxu0 %v4034_v38  ;;  %3478 = vmatprep.subr.mxu1 %v3838_v0 }
  0x49   : > { %3489 = vmatprep.subr.mxu0 %v3838_v0  ;;  %3479 = vmatpush3.msra.mxu1 %v3977_v11 }
  0x4a   : > { %3490 = vmatpush3.msra.mxu0 %v459_v22  ;;  %3480 = vmatprep.subr.mxu1 %v3838_v0 }
  0x4b   : > { %3491 = vmatprep.subr.mxu0 %v3838_v0  ;;  %3481 = vmatpush3.msra.mxu1 %v3979_v12 }
  0x4c   : > { %3492 = vmatpush3.msra.mxu0 %v466_v23  ;;  %3482 = vmatprep.subr.mxu1 %v3838_v0 }
  0x4d   : > { %3493 = vmatprep.subr.mxu0 %v3838_v0  ;;  %3483 = vmatpush3.msra.mxu1 %v3994_v19 }
  0x4e   : > { %3494 = vmatpush3.msra.mxu0 %v473_v24  ;;  %3484 = vmatprep.subr.mxu1 %v3838_v0 }
  0x4f   : > { %3495 = vmatprep.subr.mxu0 %v3838_v0  ;;  %3485 = vmatpush3.msra.mxu1 %v4009_v26 }
  0x50   : > { %3486 = vmatprep.mubr.msk.f32.mxu1 %vm3839_vm0, %v3838_v0  ;;  %3496 = vmatpush3.msra.mxu0 %v480_v27 }
  0x51   : > { %3487 = vmatmul.mubr.f32.vlgmr.msra.gmra.mxu1 %v432_v42  ;;  %3497 = vmatprep.subr.mxu0 %v3838_v0 }
  0x52   : > { %3508 = vmatprep.subr.mxu1 %v3838_v0  ;;  %3498 = vmatpush3.msra.mxu0 %v487_v35 }
  0x53   : > { %3509 = vmatpush3.msra.mxu1 %v3969_v4  ;;  %3499 = vmatprep.subr.mxu0 %v3838_v0  ;;  %v986_v4 = vand.u32 4294901760, %v985_v2 }
  0x54   : > { %3510 = vmatprep.subr.mxu1 %v3838_v0  ;;  %3500 = vmatpush3.msra.mxu0 %v494_v39 }
  0x55   : > { %3511 = vmatpush3.msra.mxu1 %v3971_v5  ;;  %3501 = vmatprep.subr.mxu0 %v3838_v0  ;;  %v1027_v5 = vand.u32 4294901760, %v1026_v3 }
  0x56   : > { %3512 = vmatprep.subr.mxu1 %v3838_v0  ;;  %3502 = vmatpush3.msra.mxu0 %v501_v45 }
  0x57   : > { %3513 = vmatpush3.msra.mxu1 %v3973_v6  ;;  %3503 = vmatprep.subr.mxu0 %v3838_v0  ;;  %v987_v6 = vsub.f32 %v985_v2, %v986_v4  ;;  %v1028_v7 = vsub.f32 %v1026_v3, %v1027_v5 }
  0x58   : > { %3514 = vmatprep.subr.mxu1 %v3838_v0  ;;  %3504 = vmatpush3.msra.mxu0 %v508_v49 }
  0x59   : > { %3505 = vmatprep.mubr.msk.f32.mxu0 %vm3839_vm0, %v3838_v0  ;;  %3515 = vmatpush3.msra.mxu1 %v3975_v10  ;;  %v988_v8 = vand.u32 4294901760, %v987_v6  ;;  %v1029_v9 = vand.u32 4294901760, %v1028_v7  ;;  %v1822_v7 = vld [vmem:[%s4334_s5] sm:$0xff] }
  0x5a   : > { %3506 = vmatmul.mubr.f32.vlgmr.msra.gmra.mxu0 %v4025_v33  ;;  %3516 = vmatprep.subr.mxu1 %v3838_v0 }
  0x5b   : > { %3524 = vmatprep.mubr.msk.f32.mxu1 %vm3839_vm0, %v3838_v0  ;;  %3517 = vmatpush3.msra.mxu1 %v3977_v11 }
  0x5c   : > { %3527 = vmatprep.subr.mxu0 %v3838_v0  ;;  %3518 = vmatprep.subr.mxu1 %v3838_v0 }
  0x5d   : > { %3529 = vmatprep.mubr.msk.f32.mxu0 %vm3839_vm0, %v3838_v0  ;;  %3519 = vmatpush3.msra.mxu1 %v3979_v12 }
  0x5e   : > { %3520 = vmatprep.subr.mxu1 %v3838_v0  ;;  %3528 = vmatpush3.msra.mxu0 %v949_v1 }
  0x5f   : > { %3521 = vmatpush3.msra.mxu1 %v3994_v19  ;;  %3537 = vmatprep.subr.mxu0 %v3838_v0 }
  0x60   : > { %3522 = vmatprep.subr.mxu1 %v3838_v0  ;;  %3530 = vmatmul.mubr.f32.vlgmr.msra.gmra.mxu0 %v988_v8 }
  0x61   : > { %3523 = vmatpush3.msra.mxu1 %v4009_v26  ;;  %3538 = vmatpush3.msra.mxu0 %v1026_v3  ;;  %v2727_v3 = vld [vmem:[%s4335_s6] sm:$0xff] }
  0x62   : > { %3525 = vmatmul.mubr.f32.vlgmr.msra.gmra.mxu1 %v4025_v33  ;;  %3532 = vmatprep.subr.mxu1 %v3838_v0  ;;  %v1368_v33 = vsel %vm910_vm2, %v1366_v29, 0 }
  0x63   : > { %3534 = vmatprep.mubr.msk.f32.mxu1 %vm3839_vm0, %v3838_v0  ;;  %3533 = vmatpush3.msra.mxu1 %v1029_v9  ;;  %v1439_v37 = vand.u32 4294901760, %v1368_v33 }
  0x64   : > { %3539 = vmatprep.mubr.msk.f32.mxu0 %vm3839_vm0, %v3838_v0  ;;  %3542 = vmatprep.subr.mxu1 %v3838_v0 }
  0x65   : > { %3540 = vmatmul.mubr.f32.vlgmr.msra.gmra.mxu0 %v985_v2  ;;  %3547 = vmatprep.subr.mxu0 %v3838_v0  ;;  %v1440_v38 = vsub.f32 %v1368_v33, %v1439_v37 }
  0x66   : > { %3535 = vmatmul.mubr.f32.vlgmr.msra.gmra.mxu1 %v984_v63  ;;  %3549 = vmatprep.mubr.msk.f32.mxu0 %vm3839_vm0, %v3838_v0 }
  0x67   : > { %3544 = vmatprep.mubr.msk.f32.mxu1 %vm3839_vm0, %v3838_v0  ;;  %3543 = vmatpush3.msra.mxu1 %v949_v1  ;;  %v1441_v39 = vand.u32 4294901760, %v1440_v38 }
  0x68   : > { %3548 = vmatpush3.msra.mxu0 %v1027_v5  ;;  %3552 = vmatprep.subr.mxu1 %v3838_v0  ;;  %v2736_v5 = vld [vmem:[%s4337_s8] sm:$0xf] }
  0x69   : > { %3550 = vmatmul.mubr.f32.vlgmr.msra.gmra.mxu0 %v984_v63  ;;  %3557 = vmatprep.subr.mxu0 %v3838_v0  ;;  %v1442_v40 = vsub.f32 %v1440_v38, %v1441_v39 }
  0x6a   : > { %3545 = vmatmul.mubr.f32.vlgmr.msra.gmra.mxu1 %v986_v4  ;;  %3559 = vmatprep.mubr.msk.f32.mxu0 %vm3839_vm0, %v3838_v0  ;;  %v3840_v4 = vmov 0  }
  0x6b   : > { %3554 = vmatprep.mubr.msk.f32.mxu1 %vm3839_vm0, %v3838_v0  ;;  %3553 = vmatpush3.msra.mxu1 %v949_v1  ;;  %v1443_v43 = vand.u32 4294901760, %v1442_v40 }
  0x6c   : > { %3562 = vmatprep.subr.mxu1 %v3838_v0  ;;  %3732 = vset.pattern.permute.xlu0 %v3840_v4 }
  0x6d   : > { %2730 = vperm.xlu0 %3732, %v2727_v3  }
  0x6e   : > { %3555 = vmatmul.mubr.f32.vlgmr.msra.gmra.mxu1 %v984_v63 }
  0x6f   : > { %3564 = vmatprep.mubr.msk.f32.mxu1 %vm3839_vm0, %v3838_v0 }
  0x71   : > { %2739 = vperm.xlu0 %3732, %v2736_v5  }
  0xf8   : > { %v436_v10 = vpop.f32.mrf.mxu0 }
  0xfa   : > { %v3431_v11 = vpop.f32.mrf.mxu0 }
  0xfe   : > { %v547_v12 = vpop.f32.mrf.mxu1 }
  0xff   : > { %v548_v20 = vadd.f32 %v547_v12, %v436_v10  ;;  %v1824_v10 = vsel %vm910_vm2, %v1822_v7, 0 }
 0x100   : > { %v3450_v13 = vpop.f32.mrf.mxu1  ;;  %v4225_v12 = vand.u32 4294901760, %v1824_v10 }
 0x108   : > { %v635_v14 = vpop.f32.mrf.mxu0 }
 0x109   : > { %v636_v22 = vadd.f32 %v635_v14, %v548_v20 }
 0x10a   : > { %v3469_v15 = vpop.f32.mrf.mxu0 }
 0x111   : > { %v716_v16 = vpop.f32.mrf.mxu1 }
 0x112   : > { %v717_v23 = vadd.f32 %v716_v16, %v636_v22 }
 0x113   : > { %v3488_v17 = vpop.f32.mrf.mxu1 }
 0x11a   : > { %v811_v19 = vpop.f32.mrf.mxu0 }
 0x11b   : > { %v812_v24 = vadd.f32 %v811_v19, %v717_v23  ;;  %v1896_v19 = vsub.f32 %v1824_v10, %v4225_v12 }
 0x11c   : > { %v3507_v21 = vpop.f32.mrf.mxu0 }
 0x120   : > { %v990_v49 = vpop.f32.mrf.mxu0 }
 0x122   : > { %v890_v25 = vpop.f32.mrf.mxu1  ;;  %v3531_v50 = vpop.f32.mrf.mxu0 }
 0x123   : > { %v891_v26 = vadd.f32 %v890_v25, %v812_v24  ;;  %v1821_v24 = vld [vmem:[%s4333_s4] sm:$0xff] }
 0x124   : > { %v3526_v27 = vpop.f32.mrf.mxu1 }
 0x125   : > { %v894_v28 = vmax.f32 %v891_v26, 0.0  ;;  %v1140_v54 = vpop.f32.mrf.mxu0  ;;  %v1897_v27 = vand.u32 4294901760, %v1896_v19 }
 0x126   : > { %v1066_v51 = vpop.f32.mrf.mxu1 }
 0x127   : > { %3735 = vrsqrt.f32 %v894_v28  ;;  %vm897_vm4 = vcmp.eq.f32.partialorder %v894_v28, inf  ;;  %v900_v32 = vand.u32 2147483648, %v894_v28  ;;  %vm899_vm5 = vcmp.eq.f32.partialorder %v894_v28, 0.0  ;;  %v3541_v56 = vpop.f32.mrf.mxu0 }
 0x128   : > { %v1067_v52 = vadd.f32 %v1066_v51, %v990_v49  ;;  %v3536_v53 = vpop.f32.mrf.mxu1 }
 0x129   : > { %v1288_v60 = vpop.f32.mrf.mxu0 }
 0x12a   : > { %v1141_v55 = vadd.f32 %v1140_v54, %v1067_v52  ;;  %v1214_v57 = vpop.f32.mrf.mxu1 }
 0x12b   : > { %v3551_v63 = vpop.f32.mrf.mxu0 }
 0x12c   : > { %v1215_v58 = vadd.f32 %v1214_v57, %v1141_v55  ;;  %v3546_v59 = vpop.f32.mrf.mxu1 }
 0x12e   : > { %v1289_v61 = vadd.f32 %v1288_v60, %v1215_v58  ;;  %v1360_v62 = vpop.f32.mrf.mxu1 }
 0x130   : > { %v1361_v1 = vadd.f32 %v1360_v62, %v1289_v61  ;;  %v3556_v2 = vpop.f32.mrf.mxu1 }
 0x131   : > { %v2735_v2 = vld [vmem:[%s4336_s7] sm:$0xf] }
 0x132   : > { %v1364_v25 = vsub.f32 1.0, %v1361_v1 }
 0x134   : > { %v3736_v30 = vpop.eup %3735 }
 0x135   : > { %v896_v31 = vmul.f32 %v3736_v30, %v894_v28  ;;  %v2276_v30 = vsel %vm910_vm2, %v1821_v24, 0 }
 0x137   : > { %v898_v34 = vsel %vm897_vm4, %v894_v28, %v896_v31 }
 0x138   : > { %v901_v35 = vsel %vm899_vm5, %v900_v32, %v898_v34  ;;  %v1365_v32 = vmax.f32 %v1364_v25, 0.0  ;;  %v1898_v34 = vsub.f32 %v1896_v19, %v1897_v27 }
 0x139   : > { %v906_v36 = vadd.f32 0.0001, %v901_v35  ;;  %v4232_v35 = vand.u32 4294901760, %v2276_v30 }
 0x13b   : > { %3737 = vrcp.f32 %v906_v36 }
 0x148   : > { %v3738_v41 = vpop.eup %3737 }
 0x149   : > { %v1371_v42 = vsel %vm914_vm3, %v3738_v41, 0  ;;  %v2348_v41 = vsub.f32 %v2276_v30, %v4232_v35 }
 0x14a   : > { %v1404_v44 = vand.u32 4294901760, %v1371_v42 }
 0x14c   : > { %3558 = vmatpush3.msra.mxu0 %v1404_v44  ;;  %v1481_v45 = vsub.f32 %v1371_v42, %v1404_v44 }
 0x14d   : > { %3560 = vmatmul.mubr.f32.vlgmr.msra.gmra.mxu0 %v1443_v43  ;;  %3567 = vmatprep.subr.mxu0 %v3838_v0 }
 0x14e   : > { %3568 = vmatpush3.msra.mxu0 %v1481_v45  ;;  %3569 = vmatprep.mubr.msk.f32.mxu0 %vm3839_vm0, %v3838_v0  ;;  %v1482_v46 = vand.u32 4294901760, %v1481_v45 }
 0x14f   : > { %3577 = vmatprep.subr.mxu0 %v3838_v0 }
 0x150   : > { %v1483_v47 = vsub.f32 %v1481_v45, %v1482_v46  ;;  %v2349_v45 = vand.u32 4294901760, %v2348_v41 }
 0x151   : > { %3570 = vmatmul.mubr.f32.vlgmr.msra.gmra.mxu0 %v1440_v38 }
 0x152   : > { %3578 = vmatpush3.msra.mxu0 %v1482_v46  ;;  %v1484_v48 = vand.u32 4294901760, %v1483_v47  ;;  %3579 = vmatprep.mubr.msk.f32.mxu0 %vm3839_vm0, %v3838_v0  ;;  %v2350_v49 = vsub.f32 %v2348_v41, %v2349_v45 }
 0x153   : > { %3587 = vmatprep.subr.mxu0 %v3838_v0 }
 0x154   : > { %3563 = vmatpush3.msra.mxu1 %v1484_v48  ;;  %v2351_v51 = vand.u32 4294901760, %v2350_v49 }
 0x155   : > { %3565 = vmatmul.mubr.f32.vlgmr.msra.gmra.mxu1 %v1439_v37  ;;  %3572 = vmatprep.subr.mxu1 %v3838_v0 }
 0x156   : > { %3573 = vmatpush3.msra.mxu1 %v1404_v44  ;;  %3574 = vmatprep.mubr.msk.f32.mxu1 %vm3839_vm0, %v3838_v0 }
 0x157   : > { %3582 = vmatprep.subr.mxu1 %v3838_v0  ;;  %3580 = vmatmul.mubr.f32.vlgmr.msra.gmra.mxu0 %v1439_v37 }
 0x158   : > { %3589 = vmatprep.mubr.msk.f32.mxu0 %vm3839_vm0, %v3838_v0 }
 0x159   : > { %3575 = vmatmul.mubr.f32.vlgmr.msra.gmra.mxu1 %v1441_v39  ;;  %v1899_v39 = vand.u32 4294901760, %v1898_v34 }
 0x15a   : > { %3583 = vmatpush3.msra.mxu1 %v1404_v44  ;;  %3584 = vmatprep.mubr.msk.f32.mxu1 %vm3839_vm0, %v3838_v0 }
 0x15b   : > { %3592 = vmatprep.subr.mxu1 %v3838_v0 }
 0x15d   : > { %3585 = vmatmul.mubr.f32.vlgmr.msra.gmra.mxu1 %v1439_v37  ;;  %v2279_v37 = vsel %vm914_vm3, %v1365_v32, 0 }
 0x15e   : > { %3594 = vmatprep.mubr.msk.f32.mxu1 %vm3839_vm0, %v3838_v0  ;;  %v2312_v42 = vand.u32 4294901760, %v2279_v37 }
 0x160   : > { %v2389_v46 = vsub.f32 %v2279_v37, %v2312_v42 }
 0x162   : > { %v2390_v50 = vand.u32 4294901760, %v2389_v46 }
 0x164   : > { %v2391_v52 = vsub.f32 %v2389_v46, %v2390_v50 }
 0x166   : > { %v2392_v53 = vand.u32 4294901760, %v2391_v52 }
 0x20d   : > { %v1445_v6 = vpop.f32.mrf.mxu0 }
 0x20f   : > { %v3561_v8 = vpop.f32.mrf.mxu0 }
 0x210   : > { %v2744_v8 = vsel %vm2742_vm6, %v2735_v2, 0 }
 0x211   : > { %v1595_v9 = vpop.f32.mrf.mxu0 }
 0x213   : > { %v3571_v11 = vpop.f32.mrf.mxu0 }
 0x215   : > { %v1521_v13 = vpop.f32.mrf.mxu1 }
 0x216   : > { %v1522_v14 = vadd.f32 %v1521_v13, %v1445_v6  ;;  %v2812_v13 = vand.u32 4294901760, %v2744_v8 }
 0x217   : > { %v3566_v15 = vpop.f32.mrf.mxu1  ;;  %v1743_v16 = vpop.f32.mrf.mxu0 }
 0x218   : > { %v1596_v17 = vadd.f32 %v1595_v9, %v1522_v14 }
 0x219   : > { %v1669_v20 = vpop.f32.mrf.mxu1  ;;  %v3581_v21 = vpop.f32.mrf.mxu0 }
 0x21a   : > { %v1670_v22 = vadd.f32 %v1669_v20, %v1596_v17  ;;  %v2813_v21 = vsub.f32 %v2744_v8, %v2812_v13 }
 0x21b   : > { %v3576_v23 = vpop.f32.mrf.mxu1 }
 0x21c   : > { %v1744_v26 = vadd.f32 %v1743_v16, %v1670_v22 }
 0x21d   : > { %v1815_v28 = vpop.f32.mrf.mxu1 }
 0x21e   : > { %v1816_v29 = vadd.f32 %v1815_v28, %v1744_v26 }
 0x21f   : > { %v3586_v31 = vpop.f32.mrf.mxu1 }
 0x220   : > { %v1819_v33 = vsub.f32 1.0, %v1816_v29  ;;  %v2731_v31 = vpop.permute.xlu0 %2730 }
 0x222   : > { %v1820_v36 = vmax.f32 %v1819_v33, 0.0 }
 0x224   : > { %v1827_v38 = vsel %vm914_vm3, %v1820_v36, 0 }
 0x225   : > { %v1860_v40 = vand.u32 4294901760, %v1827_v38 }
 0x227   : > { %v1937_v43 = vsub.f32 %v1827_v38, %v1860_v40  ;;  %3588 = vmatpush3.msra.mxu0 %v1860_v40 }
 0x228   : > { %3590 = vmatmul.mubr.f32.vlgmr.msra.gmra.mxu0 %v1899_v39  ;;  %3597 = vmatprep.subr.mxu0 %v3838_v0 }
 0x229   : > { %3598 = vmatpush3.msra.mxu0 %v1937_v43  ;;  %3599 = vmatprep.mubr.msk.f32.mxu0 %vm3839_vm0, %v3838_v0  ;;  %v1938_v44 = vand.u32 4294901760, %v1937_v43 }
 0x22a   : > { %3607 = vmatprep.subr.mxu0 %v3838_v0 }
 0x22b   : > { %v1939_v47 = vsub.f32 %v1937_v43, %v1938_v44 }
 0x22c   : > { %3600 = vmatmul.mubr.f32.vlgmr.msra.gmra.mxu0 %v1896_v19 }
 0x22d   : > { %3608 = vmatpush3.msra.mxu0 %v1938_v44  ;;  %v1940_v48 = vand.u32 4294901760, %v1939_v47  ;;  %3609 = vmatprep.mubr.msk.f32.mxu0 %vm3839_vm0, %v3838_v0 }
 0x22e   : > { %3617 = vmatprep.subr.mxu0 %v3838_v0 }
 0x22f   : > { %3593 = vmatpush3.msra.mxu1 %v1940_v48 }
 0x230   : > { %3595 = vmatmul.mubr.f32.vlgmr.msra.gmra.mxu1 %v4225_v12  ;;  %3602 = vmatprep.subr.mxu1 %v3838_v0 }
 0x231   : > { %3610 = vmatmul.mubr.f32.vlgmr.msra.gmra.mxu0 %v4225_v12  ;;  %3603 = vmatpush3.msra.mxu1 %v1860_v40 }
 0x232   : > { %3618 = vmatpush3.msra.mxu0 %v2312_v42  ;;  %3604 = vmatprep.mubr.msk.f32.mxu1 %vm3839_vm0, %v3838_v0 }
 0x233   : > { %3612 = vmatprep.subr.mxu1 %v3838_v0  ;;  %3619 = vmatprep.mubr.msk.f32.mxu0 %vm3839_vm0, %v3838_v0 }
 0x234   : > { %3627 = vmatprep.subr.mxu0 %v3838_v0  ;;  %3605 = vmatmul.mubr.f32.vlgmr.msra.gmra.mxu1 %v1897_v27  ;;  %v2814_v27 = vand.u32 4294901760, %v2813_v21 }
 0x235   : > { %3613 = vmatpush3.msra.mxu1 %v1860_v40  ;;  %3620 = vmatmul.mubr.f32.vlgmr.msra.gmra.mxu0 %v2351_v51 }
 0x236   : > { %3628 = vmatpush3.msra.mxu0 %v2389_v46  ;;  %3614 = vmatprep.mubr.msk.f32.mxu1 %vm3839_vm0, %v3838_v0  ;;  %v2815_v33 = vsub.f32 %v2813_v21, %v2814_v27 }
 0x237   : > { %3622 = vmatprep.subr.mxu1 %v3838_v0  ;;  %3629 = vmatprep.mubr.msk.f32.mxu0 %vm3839_vm0, %v3838_v0 }
 0x238   : > { %3637 = vmatprep.subr.mxu0 %v3838_v0  ;;  %3615 = vmatmul.mubr.f32.vlgmr.msra.gmra.mxu1 %v4225_v12  ;;  %v2816_v36 = vand.u32 4294901760, %v2815_v33 }
 0x239   : > { %3623 = vmatpush3.msra.mxu1 %v2392_v53  ;;  %3630 = vmatmul.mubr.f32.vlgmr.msra.gmra.mxu0 %v2348_v41 }
 0x23a   : > { %3638 = vmatpush3.msra.mxu0 %v2390_v50  ;;  %3624 = vmatprep.mubr.msk.f32.mxu1 %vm3839_vm0, %v3838_v0 }
 0x23b   : > { %3632 = vmatprep.subr.mxu1 %v3838_v0  ;;  %3639 = vmatprep.mubr.msk.f32.mxu0 %vm3839_vm0, %v3838_v0 }
 0x23c   : > { %3625 = vmatmul.mubr.f32.vlgmr.msra.gmra.mxu1 %v4232_v35  ;;  %3647 = vmatprep.subr.mxu0 %v3838_v0 }
 0x23d   : > { %3633 = vmatpush3.msra.mxu1 %v2312_v42  ;;  %3634 = vmatprep.mubr.msk.f32.mxu1 %vm3839_vm0, %v3838_v0 }
 0x23e   : > { %3642 = vmatprep.subr.mxu1 %v3838_v0  ;;  %3640 = vmatmul.mubr.f32.vlgmr.msra.gmra.mxu0 %v4232_v35 }
 0x23f   : > { %3649 = vmatprep.mubr.msk.f32.mxu0 %vm3839_vm0, %v3838_v0 }
 0x240   : > { %3635 = vmatmul.mubr.f32.vlgmr.msra.gmra.mxu1 %v2349_v45  ;;  %v2740_v45 = vpop.permute.xlu0 %2739 }
 0x241   : > { %3643 = vmatpush3.msra.mxu1 %v2312_v42  ;;  %3644 = vmatprep.mubr.msk.f32.mxu1 %vm3839_vm0, %v3838_v0 }
 0x242   : > { %3652 = vmatprep.subr.mxu1 %v3838_v0 }
 0x244   : > { %3645 = vmatmul.mubr.f32.vlgmr.msra.gmra.mxu1 %v4232_v35 }
 0x245   : > { %3654 = vmatprep.mubr.msk.f32.mxu1 %vm3839_vm0, %v3838_v0 }
 0x2e8   : > { %v1901_v54 = vpop.f32.mrf.mxu0 }
 0x2ea   : > { %v3591_v55 = vpop.f32.mrf.mxu0 }
 0x2ec   : > { %v2051_v56 = vpop.f32.mrf.mxu0 }
 0x2ee   : > { %v3601_v57 = vpop.f32.mrf.mxu0 }
 0x2f0   : > { %v1977_v58 = vpop.f32.mrf.mxu1 }
 0x2f1   : > { %v1978_v59 = vadd.f32 %v1977_v58, %v1901_v54  ;;  %v2199_v60 = vpop.f32.mrf.mxu0 }
 0x2f2   : > { %v3596_v61 = vpop.f32.mrf.mxu1 }
 0x2f3   : > { %v2052_v62 = vadd.f32 %v2051_v56, %v1978_v59  ;;  %v3611_v63 = vpop.f32.mrf.mxu0 }
 0x2f4   : > { %v2125_v1 = vpop.f32.mrf.mxu1 }
 0x2f5   : > { %v2126_v3 = vadd.f32 %v2125_v1, %v2052_v62  ;;  %v2353_v4 = vpop.f32.mrf.mxu0 }
 0x2f6   : > { %v3606_v5 = vpop.f32.mrf.mxu1 }
 0x2f7   : > { %v2200_v6 = vadd.f32 %v2199_v60, %v2126_v3  ;;  %v3621_v7 = vpop.f32.mrf.mxu0 }
 0x2f8   : > { %v2271_v9 = vpop.f32.mrf.mxu1 }
 0x2f9   : > { %v2272_v10 = vadd.f32 %v2271_v9, %v2200_v6  ;;  %v2503_v11 = vpop.f32.mrf.mxu0 }
 0x2fa   : > { %v3616_v12 = vpop.f32.mrf.mxu1 }
 0x2fb   : > { %v2354_v14 = vadd.f32 %v2353_v4, %v2272_v10  ;;  %v3631_v15 = vpop.f32.mrf.mxu0 }
 0x2fc   : > { %v2429_v16 = vpop.f32.mrf.mxu1 }
 0x2fd   : > { %v2430_v17 = vadd.f32 %v2429_v16, %v2354_v14 }
 0x2fe   : > { %v3626_v19 = vpop.f32.mrf.mxu1  ;;  %v2651_v20 = vpop.f32.mrf.mxu0 }
 0x2ff   : > { %v2504_v22 = vadd.f32 %v2503_v11, %v2430_v17 }
 0x300   : > { %v2577_v23 = vpop.f32.mrf.mxu1  ;;  %v3641_v24 = vpop.f32.mrf.mxu0 }
 0x301   : > { %v2578_v25 = vadd.f32 %v2577_v23, %v2504_v22 }
 0x302   : > { %v3636_v26 = vpop.f32.mrf.mxu1 }
 0x303   : > { %v2652_v28 = vadd.f32 %v2651_v20, %v2578_v25 }
 0x304   : > { %v2723_v29 = vpop.f32.mrf.mxu1 }
 0x305   : > { %v2724_v30 = vadd.f32 %v2723_v29, %v2652_v28 }
 0x306   : > { %v3646_v32 = vpop.f32.mrf.mxu1 }
 0x307   : > { %v2733_v34 = vadd.f32 %v2731_v31, %v2724_v30 }
 0x309   : > { %v2734_v35 = vmax.f32 %v2733_v34, 0.0 }
 0x30b   : > { %v2777_v37 = vand.u32 4294901760, %v2734_v35 }
 0x30d   : > { %v2854_v38 = vsub.f32 %v2734_v35, %v2777_v37  ;;  %3648 = vmatpush3.msra.mxu0 %v2777_v37 }
 0x30e   : > { %3650 = vmatmul.mubr.f32.vlgmr.msra.gmra.mxu0 %v2816_v36  ;;  %3657 = vmatprep.subr.mxu0 %v3838_v0 }
 0x30f   : > { %3658 = vmatpush3.msra.mxu0 %v2854_v38  ;;  %3659 = vmatprep.mubr.msk.f32.mxu0 %vm3839_vm0, %v3838_v0  ;;  %v2855_v39 = vand.u32 4294901760, %v2854_v38 }
 0x310   : > { %3667 = vmatprep.subr.mxu0 %v3838_v0 }
 0x311   : > { %v2856_v40 = vsub.f32 %v2854_v38, %v2855_v39 }
 0x312   : > { %3660 = vmatmul.mubr.f32.vlgmr.msra.gmra.mxu0 %v2813_v21 }
 0x313   : > { %3668 = vmatpush3.msra.mxu0 %v2855_v39  ;;  %v2857_v41 = vand.u32 4294901760, %v2856_v40  ;;  %3669 = vmatprep.mubr.msk.f32.mxu0 %vm3839_vm0, %v3838_v0 }
 0x315   : > { %3653 = vmatpush3.msra.mxu1 %v2857_v41 }
 0x316   : > { %3655 = vmatmul.mubr.f32.vlgmr.msra.gmra.mxu1 %v2812_v13  ;;  %3662 = vmatprep.subr.mxu1 %v3838_v0 }
 0x317   : > { %3663 = vmatpush3.msra.mxu1 %v2777_v37  ;;  %3664 = vmatprep.mubr.msk.f32.mxu1 %vm3839_vm0, %v3838_v0 }
 0x318   : > { %3672 = vmatprep.subr.mxu1 %v3838_v0  ;;  %3670 = vmatmul.mubr.f32.vlgmr.msra.gmra.mxu0 %v2812_v13 }
 0x31a   : > { %3665 = vmatmul.mubr.f32.vlgmr.msra.gmra.mxu1 %v2814_v27 }
 0x31b   : > { %3673 = vmatpush3.msra.mxu1 %v2777_v37  ;;  %3674 = vmatprep.mubr.msk.f32.mxu1 %vm3839_vm0, %v3838_v0 }
 0x31e   : > { %3675 = vmatmul.mubr.f32.vlgmr.msra.gmra.mxu1 %v2812_v13 }
 0x3ce   : > { %v2818_v42 = vpop.f32.mrf.mxu0 }
 0x3cf   : > { %v2819_v47 = vadd.f32 %v2818_v42, %v2740_v45 }
 0x3d0   : > { %v3651_v43 = vpop.f32.mrf.mxu0 }
 0x3d2   : > { %v2968_v44 = vpop.f32.mrf.mxu0 }
 0x3d4   : > { %v3661_v46 = vpop.f32.mrf.mxu0 }
 0x3d6   : > { %v2894_v48 = vpop.f32.mrf.mxu1 }
 0x3d7   : > { %v2895_v49 = vadd.f32 %v2894_v48, %v2819_v47 }
 0x3d8   : > { %v3656_v50 = vpop.f32.mrf.mxu1  ;;  %v3116_v51 = vpop.f32.mrf.mxu0 }
 0x3d9   : > { %v2969_v52 = vadd.f32 %v2968_v44, %v2895_v49 }
 0x3da   : > { %v3042_v53 = vpop.f32.mrf.mxu1  ;;  %v3671_v54 = vpop.f32.mrf.mxu0 }
 0x3db   : > { %v3043_v55 = vadd.f32 %v3042_v53, %v2969_v52 }
 0x3dc   : > { %v3666_v56 = vpop.f32.mrf.mxu1 }
 0x3dd   : > { %v3117_v57 = vadd.f32 %v3116_v51, %v3043_v55 }
 0x3de   : > { %v3188_v0 = vpop.f32.mrf.mxu1 }
 0x3df   : > { %v3189_v58 = vadd.f32 %v3188_v0, %v3117_v57 }
 0x3e0   : > { %v3676_v59 = vpop.f32.mrf.mxu1 }
 0x3e1   : > { %v3294_v60 = vmul.f32 -1.442695, %v3189_v58 }
 0x3e3   : > { %3739 = vpow2.f32 %v3294_v60 }
 0x3f0   : > { %v3740_v61 = vpop.eup %3739 }
 0x3f1   : > { %v3195_v62 = vadd.f32 1.0, %v3740_v61 }
 0x3f3   : > { %3741 = vrcp.f32 %v3195_v62 }
 0x400   : > { %v3742_v63 = vpop.eup %3741 }
 0x401   : > { %v3198_v1 = vmul.f32 %v3742_v63, %v3991_v18 }
 0x403   : > { %3200 = vst.msk [vmem:[%s338_s27] sm:$0xf] %vm3199_vm7, %v3198_v1 }
 0x404   : > { %3782 = shalt.err (!%p3779_p0)
}
 0x405   : > { %s3783_s25 = scalar_lea.hbm %s3213_s16, 64  ;;  %s3787_s27 = scalar_lea.hbm %s4338_s9, 384 }
 0x406   : > { %p3784_p1 = scmp.ne.s32.totalorder %s3213_s16, %s3783_s25  ;;  %p3788_p4 = scmp.lt.s32.totalorder %s3213_s16, %s4338_s9 }
 0x407   : > { %p3789_p7 = scmp.lt.s32.totalorder %s3787_s27, %s3783_s25 }
 0x408   : > { %p3785_p2 = pnand %p3784_p1, %p3930_p5 }
 0x409   : > { %p3790_p8 = por %p3789_p7, %p3788_p4 }
 0x40a   : > { %p3786_p3 = pneg %p3785_p2 }
 0x40c   : > { %p3791_p6 = pnand %p3790_p8, %p3786_p3 }
 0x40e   : > { %3794 = shalt.err (!%p3791_p6)
}
 0x40f   : > { %3681 = dma.vmem_to_hbm [thread:$0]  (%p3930_p5), %s3216_s28, 64, %s3213_s16, %s3202_s17  }
 0x410 PF: > { %p3693_p9 = scmp.ge.s32.totalorder %s3833_s12, 2  ;;  %s3227_s21 = sand.u32 1, %s3821_s30  }
 0x411   : > { %p4342_p10 = scmp.ne.s32.totalorder %s4340_s20, 0  ;;  %s3228_s22 = scalar_lea.sflag [#allocation4], %s3227_s21 }
 0x413   : > { %p3688_p11 = pnand %p3693_p9, %p4342_p10 }
 0x415   : > { %p3689_p12 = pneg %p3688_p11 }
 0x417   : > { %3816 = dma.done.wait (%p3689_p12), %s3228_s22, 64  }
 0x418   : > { %3818 = vsyncadd (%p3689_p12), %s3228_s22, 4294967232  ;;  %p20_p13 = scmp.ge.s32.totalorder %s3917_s15, 8   ;;  %s4343_s30 = smov %s3825_s10 }
 0x419   : > { %s4344_s10 = smov %s3829_s11  ;;  %s4345_s11 = smov %s3928_s18 }
 0x41a   : > { %s4346_s12 = smov %s3917_s15  ;;  %22 = sbr.rel (!%p20_p13) target bundleno = 4 (0x4), region = 96 }
 0x41f   :  { %3233 = vsyncpa [#allocation3], 1 }
 0x420   :  { %3235 = vsyncpa [#allocation3 + $0x1], 1 }
 0x421   :  { %3236 = vsyncpa [#allocation4], 1 }
 0x422   :  { %3238 = vsyncpa [#allocation4 + $0x1], 1 }

</bundles_post_ra>
